<compile_context>
chip_gen: v6e
topology: v6e:2x2x1
jax: 0.10.0
libtpu: 0.0.40
codegen_flags: <defaults>
</compile_context>

<pallas_src>
import math

import jax
import jax.numpy as jnp
from jax.experimental import pallas as pl
from jax.experimental.pallas import tpu as pltpu

HIDDEN = 128
NEG_SLOPE = 0.01               # PyTorch nn.LeakyReLU default
DEFAULT_BLOCK_B = 1024         # rows per grid step when the batch is large
SPLIT_MIN_ROWS = 256           # min rows per step worth splitting for megacore
X_VMEM_BUDGET = 24 * 1024 * 1024   # x double-buffer budget (headroom on v7x 64 MiB)


def _cdiv(a, b):
    return -(-a // b)


def _round_up(n, m):
    return ((n + m - 1) // m) * m


def critic_kernel(x_ref, w1_ref, b1_ref, w2_ref, b2_ref, o_ref):
    # Layer 1 on the MXU: f32 inputs, f32 accumulation.
    h = jnp.dot(x_ref[...], w1_ref[...],
                preferred_element_type=jnp.float32)          # (TB, 128)
    h = h + b1_ref[...]                                      # (1, 128) broadcasts
    h = jnp.where(h > 0, h, NEG_SLOPE * h)                   # LeakyReLU

    # Layer 2 (128 -> 1) also on the MXU: small (128,1) stationary weight,
    # ~TB/8 vmatmuls -- far cheaper than an XLU cross-lane reduce.
    o = jnp.dot(h, w2_ref[...], preferred_element_type=jnp.float32)   # (TB, 1)
    o_ref[...] = (o + b2_ref[0, 0]).astype(o_ref.dtype)


def _choose_tile(batch, d_pad, block_b):
    """Pick the batch tile: big, VMEM-safe, >=2 grid steps for big batches."""
    n_tiles = _cdiv(batch, block_b)
    # v7x has 2 TensorCores; ensure the "parallel" grid has >= 2 steps once
    # the batch is big enough that splitting beats per-step overhead.
    if n_tiles < 2 and batch >= 2 * SPLIT_MIN_ROWS:
        n_tiles = 2
    tb = _cdiv(batch, n_tiles)
    # VMEM guard: 2x (double-buffer) x-tile (f32, lane-padded) + 2x output
    # column (lane-padded to 128) per row of tile.
    per_row_bytes = 8 * (d_pad + 128)
    max_tb = max(8, (X_VMEM_BUDGET // per_row_bytes) // 8 * 8)
    tb = min(tb, max_tb)
    if tb >= batch:
        return batch                     # one full block (any row count legal)
    return _round_up(tb, 8)              # tiled path: sublane-aligned


def critic_forward(x, w1, b1, w2, b2, *, block_b=DEFAULT_BLOCK_B):
    """x: (batch, input_size) f32. Returns (batch, 1) f32."""
    batch, d = x.shape
    d_pad = _round_up(d, 128)

    tb = _choose_tile(batch, d_pad, block_b)
    grid = (_cdiv(batch, tb),)           # last block may be partial

    # One-time wrapper-side reshapes (no dtype casts, no padding passes).
    w1_f = w1.astype(jnp.float32)
    b1_row = b1.reshape(1, HIDDEN).astype(jnp.float32)
    w2_col = w2.reshape(HIDDEN, 1).astype(jnp.float32)
    b2_sc = b2.reshape(1, 1).astype(jnp.float32)        # scalar -> SMEM

    flops = 2 * batch * d * HIDDEN + 2 * batch * HIDDEN
    bytes_accessed = (batch * d * 4                      # x (f32, read once)
                      + d * HIDDEN * 4                   # w1
                      + 2 * HIDDEN * 4 + 4               # b1, w2, b2
                      + batch * 4)                       # output

    # Scoped-VMEM limit sized to actual (padded) usage; capped well under the
    # 64 MiB physical VMEM of v7x.
    tb_pad = _round_up(tb, 8)
    vmem_need = (2 * tb_pad * d_pad * 4        # x double-buffer
                 + 2 * tb_pad * 128 * 4        # output column, lane-padded
                 + 2 * d_pad * HIDDEN * 4      # w1 (resident, 2 buffers)
                 + (1 << 20))                  # b1 / w2 / slack
    vmem_limit = int(min(48 * 1024 * 1024,
                         max(16 * 1024 * 1024, vmem_need * 3 // 2)))

    out = pl.pallas_call(
        critic_kernel,
        out_shape=jax.ShapeDtypeStruct((batch, 1), jnp.float32),
        grid_spec=pltpu.PrefetchScalarGridSpec(
            num_scalar_prefetch=0,
            grid=grid,
            in_specs=[
                pl.BlockSpec((tb, d), lambda i: (i, 0)),            # x: batch-tiled
                pl.BlockSpec((d, HIDDEN), lambda i: (0, 0)),        # w1: resident
                pl.BlockSpec((1, HIDDEN), lambda i: (0, 0)),        # b1: resident
                pl.BlockSpec((HIDDEN, 1), lambda i: (0, 0)),        # w2: resident
                pl.BlockSpec(memory_space=pltpu.MemorySpace.SMEM),  # b2 scalar
            ],
            out_specs=pl.BlockSpec((tb, 1), lambda i: (i, 0)),
        ),
        compiler_params=pltpu.CompilerParams(
            dimension_semantics=("parallel",),       # megacore sharding on v7x
            vmem_limit_bytes=vmem_limit,
        ),
        cost_estimate=pl.CostEstimate(
            flops=flops, transcendentals=0, bytes_accessed=bytes_accessed),
    )(x.astype(jnp.float32), w1_f, b1_row, w2_col, b2_sc)

    return out


def init_critic_params(key, input_size):
    """Deterministic init mirroring torch.nn.Linear's U(-1/sqrt(fan_in), +1/sqrt(fan_in))."""
    k1, k2, k3, k4 = jax.random.split(key, 4)
    bound1 = 1.0 / math.sqrt(input_size)
    bound2 = 1.0 / math.sqrt(HIDDEN)
    w1 = jax.random.uniform(k1, (input_size, HIDDEN), jnp.float32, -bound1, bound1)
    b1 = jax.random.uniform(k2, (1, HIDDEN), jnp.float32, -bound1, bound1)
    w2 = jax.random.uniform(k3, (HIDDEN, 1), jnp.float32, -bound2, bound2)
    b2 = jax.random.uniform(k4, (1, 1), jnp.float32, -bound2, bound2)
    return w1, b1, w2, b2


def _reference(x, w1, b1, w2, b2):
    # Pure-f32 JAX reference (same math as the PyTorch forward).
    h = x @ w1 + b1
    h = jnp.where(h > 0, h, NEG_SLOPE * h)
    return h @ w2 + b2


if __name__ == "__main__":
    key = jax.random.PRNGKey(0)
    k_params, k_x1, k_x2 = jax.random.split(key, 3)

    input_size = 16
    w1, b1, w2, b2 = init_critic_params(k_params, input_size)

    # Small example matching the module (single-agent state vector batch).
    batch = 8
    x = jax.random.normal(k_x1, (batch, input_size), jnp.float32)
    out = jax.block_until_ready(critic_forward(x, w1, b1, w2, b2))
    ref = _reference(x, w1, b1, w2, b2)
    assert out.shape == (batch, 1)
    assert jnp.allclose(out, ref, atol=1e-4, rtol=1e-4), "mismatch (batch=8)"

    # Exercise the multi-tile ("parallel" grid >= 2) + partial-last-block path.
    batch2 = 600
    x2 = jax.random.normal(k_x2, (batch2, input_size), jnp.float32)
    out2 = jax.block_until_ready(critic_forward(x2, w1, b1, w2, b2))
    ref2 = _reference(x2, w1, b1, w2, b2)
    assert out2.shape == (batch2, 1)
    assert jnp.allclose(out2, ref2, atol=1e-4, rtol=1e-4), "mismatch (batch=600)"

    print("KERNEL_OK")
</pallas_src>

<mosaic_0001>
module attributes {stable_mosaic.version = 11 : i64} {
  func.func @critic_kernel(%arg0: i32, %arg1: memref<8x16xf32, #tpu.memory_space<vmem>>, %arg2: memref<16x128xf32, #tpu.memory_space<vmem>>, %arg3: memref<1x128xf32, #tpu.memory_space<vmem>>, %arg4: memref<128x1xf32, #tpu.memory_space<vmem>>, %arg5: memref<1x1xf32, #tpu.memory_space<smem>>, %arg6: memref<8x1xf32, #tpu.memory_space<vmem>>) attributes {dimension_semantics = [#tpu.dimension_semantics<parallel>], iteration_bounds = array<i64: 1>, scalar_prefetch = 0 : i64, scratch_operands = 0 : i64, tpu.core_type = #tpu.core_type<tc>, window_params = [{transform_indices = @transform_0, window_bounds = array<i64: 8, 16>}, {pipeline_mode = #tpu.pipeline_mode<synchronous>, transform_indices = @transform_1, window_bounds = array<i64: 16, 128>}, {pipeline_mode = #tpu.pipeline_mode<synchronous>, transform_indices = @transform_2, window_bounds = array<i64: 1, 128>}, {pipeline_mode = #tpu.pipeline_mode<synchronous>, transform_indices = @transform_3, window_bounds = array<i64: 128, 1>}, {transform_indices = @transform_4, window_bounds = array<i64: 1, 1>}, {transform_indices = @transform_5, window_bounds = array<i64: 8, 1>}]} {
    %c0 = arith.constant 0 : index
    %c0_0 = arith.constant 0 : index
    %0 = vector.load %arg1[%c0, %c0_0] : memref<8x16xf32, #tpu.memory_space<vmem>>, vector<8x16xf32>
    %c0_1 = arith.constant 0 : index
    %c0_2 = arith.constant 0 : index
    %1 = vector.load %arg2[%c0_1, %c0_2] : memref<16x128xf32, #tpu.memory_space<vmem>>, vector<16x128xf32>
    %cst = arith.constant dense<0.000000e+00> : vector<8x128xf32>
    %2 = tpu.matmul %0, %1, %cst {dimension_numbers = #tpu.dot_dimension_numbers<[1], [0], [0], [1], [0, 0, 1, 1], [], []>} : vector<8x16xf32>, vector<16x128xf32>, vector<8x128xf32> -> vector<8x128xf32>
    %c0_3 = arith.constant 0 : index
    %c0_4 = arith.constant 0 : index
    %3 = vector.load %arg3[%c0_3, %c0_4] : memref<1x128xf32, #tpu.memory_space<vmem>>, vector<1x128xf32>
    %4 = vector.broadcast %3 : vector<1x128xf32> to vector<8x128xf32>
    %5 = arith.addf %2, %4 : vector<8x128xf32>
    %cst_5 = arith.constant 0.000000e+00 : f32
    %6 = vector.broadcast %cst_5 : f32 to vector<8x128xf32>
    %7 = arith.cmpf ogt, %5, %6 : vector<8x128xf32>
    %cst_6 = arith.constant 0.00999999977 : f32
    %8 = vector.broadcast %cst_6 : f32 to vector<8x128xf32>
    %9 = arith.mulf %8, %5 : vector<8x128xf32>
    %10 = arith.select %7, %5, %9 : vector<8x128xi1>, vector<8x128xf32>
    %c0_7 = arith.constant 0 : index
    %c0_8 = arith.constant 0 : index
    %11 = vector.load %arg4[%c0_7, %c0_8] : memref<128x1xf32, #tpu.memory_space<vmem>>, vector<128x1xf32>
    %cst_9 = arith.constant dense<0.000000e+00> : vector<8x1xf32>
    %12 = tpu.matmul %10, %11, %cst_9 {dimension_numbers = #tpu.dot_dimension_numbers<[1], [0], [0], [1], [0, 0, 1, 1], [], []>} : vector<8x128xf32>, vector<128x1xf32>, vector<8x1xf32> -> vector<8x1xf32>
    %c0_10 = arith.constant 0 : index
    %c0_11 = arith.constant 0 : index
    %13 = memref.load %arg5[%c0_10, %c0_11] : memref<1x1xf32, #tpu.memory_space<smem>>
    %14 = vector.broadcast %13 : f32 to vector<8x1xf32>
    %15 = arith.addf %12, %14 : vector<8x1xf32>
    %c0_12 = arith.constant 0 : index
    %c0_13 = arith.constant 0 : index
    %16 = vector.load %arg6[%c0_12, %c0_13] : memref<8x1xf32, #tpu.memory_space<vmem>>, vector<8x1xf32>
    tpu.vector_store %arg6[%c0_12, %c0_13], %15 {strides = array<i32>} : memref<8x1xf32, #tpu.memory_space<vmem>>, vector<8x1xf32>,
    return
  }
  func.func @transform_0(%arg0: i32) -> (i32, i32) {
    %c0_i32 = arith.constant 0 : i32
    %c0_i32_0 = arith.constant 0 : i32
    return %arg0, %c0_i32 : i32, i32
  }
  func.func @transform_1(%arg0: i32) -> (i32, i32) {
    %c0_i32 = arith.constant 0 : i32
    %c0_i32_0 = arith.constant 0 : i32
    %c0_i32_1 = arith.constant 0 : i32
    return %c0_i32, %c0_i32_0 : i32, i32
  }
  func.func @transform_2(%arg0: i32) -> (i32, i32) {
    %c0_i32 = arith.constant 0 : i32
    %c0_i32_0 = arith.constant 0 : i32
    %c0_i32_1 = arith.constant 0 : i32
    return %c0_i32, %c0_i32_0 : i32, i32
  }
  func.func @transform_3(%arg0: i32) -> (i32, i32) {
    %c0_i32 = arith.constant 0 : i32
    %c0_i32_0 = arith.constant 0 : i32
    %c0_i32_1 = arith.constant 0 : i32
    return %c0_i32, %c0_i32_0 : i32, i32
  }
  func.func @transform_4(%arg0: i32) -> (i32, i32) {
    %c0_i32 = arith.constant 0 : i32
    %c0_i32_0 = arith.constant 0 : i32
    %c0_i32_1 = arith.constant 0 : i32
    return %c0_i32, %c0_i32_0 : i32, i32
  }
  func.func @transform_5(%arg0: i32) -> (i32, i32) {
    %c0_i32 = arith.constant 0 : i32
    %c0_i32_0 = arith.constant 0 : i32
    return %arg0, %c0_i32 : i32, i32
  }
}

</mosaic_0001>

<bundles_post_ra>
// kernel: tpu_custom_call.1
= control target key start
LH: loop header
LB: loop body
LE: loop exit
PB: predicated region body
PF: predicated region fallthrough
CT: control target
= control target key end

     0   :  { %v268_v0 = vmov 0.0   ;;  %vm269_vm0 = vmmov 0   ;;  %vm31_vm1 = vcmask 130048   ;;  %vm196_vm3 = vcmask 7168   ;;  %s368_s1 = inlined_call_operand.vmem [shape: f32[16,128], index: 1, kind: input, shape index: {}]   ;;  %s369_s0 = inlined_call_operand.vmem [shape: f32[8,16], index: 0, kind: input, shape index: {}]   ;;  %s370_s3 = inlined_call_operand.vmem [shape: f32[128,1], index: 3, kind: input, shape index: {}]   ;;  %s371_s2 = inlined_call_operand.vmem [shape: f32[1,128], index: 2, kind: input, shape index: {}]   ;;  %s372_s4 = inlined_call_operand.<no memory space> [shape: f32[1,1], index: 4, kind: input, shape index: {}]   ;;  %s373_s5 = inlined_call_operand.vmem [shape: f32[8,1], index: 5, kind: output, shape index: {}]  }
   0x1   :  { %224 = vmatprep.subr.mxu0 %v268_v0  ;;  %v23_v1 = vld [vmem:[%s368_s1 + $0x8] sm:$0xff]  ;;  %v22_v2 = vld [vmem:[%s368_s1] sm:$0xff]  ;;  %228 = vmatprep.mubr.msk.f32.mxu0 %vm269_vm0, %v268_v0  ;;  %v123_v4 = vld [vmem:[%s370_s3 + $0x78] sm:$0xff]  ;;  %v125_v26 = vstv %s372_s4 }
   0x2   :  { %225 = vmatpush3.msra.mxu0 %v23_v1  ;;  %v21_v3 = vld [vmem:[%s369_s0] sm:$0xff]  ;;  %231 = vmatprep.subr.mxu1 %v268_v0  ;;  %v122_v5 = vld [vmem:[%s370_s3 + $0x70] sm:$0xff]  ;;  %v121_v6 = vld [vmem:[%s370_s3 + $0x68] sm:$0xff] }
   0x3   :  { %226 = vmatprep.subr.mxu0 %v268_v0  ;;  %232 = vmatpush3.msra.mxu1 %v123_v4  ;;  %v120_v7 = vld [vmem:[%s370_s3 + $0x60] sm:$0xff]  ;;  %v119_v8 = vld [vmem:[%s370_s3 + $0x58] sm:$0xff]  ;;  %v118_v9 = vld [vmem:[%s370_s3 + $0x50] sm:$0xff] }
   0x4   :  { %227 = vmatpush3.msra.mxu0 %v22_v2  ;;  %233 = vmatprep.subr.mxu1 %v268_v0  ;;  %v117_v10 = vld [vmem:[%s370_s3 + $0x48] sm:$0xff]  ;;  %v116_v11 = vld [vmem:[%s370_s3 + $0x40] sm:$0xff]  ;;  %v115_v12 = vld [vmem:[%s370_s3 + $0x38] sm:$0xff] }
   0x5   :  { %229 = vmatmul.mubr.msk.f32.vlgmr.msra.gmra.mxu0 %vm31_vm1, %v21_v3  ;;  %234 = vmatpush3.msra.mxu1 %v122_v5  ;;  %v114_v13 = vld [vmem:[%s370_s3 + $0x30] sm:$0xff]  ;;  %v113_v14 = vld [vmem:[%s370_s3 + $0x28] sm:$0xff]  ;;  %v112_v15 = vld [vmem:[%s370_s3 + $0x20] sm:$0xff] }
   0x6   :  { %235 = vmatprep.subr.mxu1 %v268_v0  ;;  %263 = vmatprep.mubr.msk.f32.mxu1 %vm269_vm0, %v268_v0  ;;  %v111_v16 = vld [vmem:[%s370_s3 + $0x18] sm:$0xff]  ;;  %v110_v17 = vld [vmem:[%s370_s3 + $0x10] sm:$0xff]  ;;  %v109_v18 = vld [vmem:[%s370_s3 + $0x8] sm:$0xff] }
   0x7   :  { %236 = vmatpush3.msra.mxu1 %v121_v6  ;;  %v108_v19 = vld [vmem:[%s370_s3] sm:$0xff] }
   0x8   :  { %237 = vmatprep.subr.mxu1 %v268_v0  ;;  %v202_v20 = vld [vmem:[%s371_s2] ss:$0 sm:$0xff] }
   0x9   :  { %238 = vmatpush3.msra.mxu1 %v120_v7 }
   0xa   :  { %239 = vmatprep.subr.mxu1 %v268_v0 }
   0xb   :  { %240 = vmatpush3.msra.mxu1 %v119_v8 }
   0xc   :  { %241 = vmatprep.subr.mxu1 %v268_v0 }
   0xd   :  { %242 = vmatpush3.msra.mxu1 %v118_v9 }
   0xe   :  { %243 = vmatprep.subr.mxu1 %v268_v0 }
   0xf   :  { %244 = vmatpush3.msra.mxu1 %v117_v10 }
  0x10   :  { %245 = vmatprep.subr.mxu1 %v268_v0 }
  0x11   :  { %246 = vmatpush3.msra.mxu1 %v116_v11 }
  0x12   :  { %247 = vmatprep.subr.mxu1 %v268_v0 }
  0x13   :  { %248 = vmatpush3.msra.mxu1 %v115_v12 }
  0x14   :  { %249 = vmatprep.subr.mxu1 %v268_v0 }
  0x15   :  { %250 = vmatpush3.msra.mxu1 %v114_v13 }
  0x16   :  { %251 = vmatprep.subr.mxu1 %v268_v0 }
  0x17   :  { %252 = vmatpush3.msra.mxu1 %v113_v14 }
  0x18   :  { %253 = vmatprep.subr.mxu1 %v268_v0 }
  0x19   :  { %254 = vmatpush3.msra.mxu1 %v112_v15 }
  0x1a   :  { %255 = vmatprep.subr.mxu1 %v268_v0 }
  0x1b   :  { %256 = vmatpush3.msra.mxu1 %v111_v16 }
  0x1c   :  { %257 = vmatprep.subr.mxu1 %v268_v0 }
  0x1d   :  { %258 = vmatpush3.msra.mxu1 %v110_v17 }
  0x1e   :  { %259 = vmatprep.subr.mxu1 %v268_v0 }
  0x1f   :  { %260 = vmatpush3.msra.mxu1 %v109_v18 }
  0x20   :  { %261 = vmatprep.subr.mxu1 %v268_v0 }
  0x21   :  { %262 = vmatpush3.msra.mxu1 %v108_v19 }
  0xc5   :  { %v101_v21 = vpop.f32.mrf.mxu0 }
  0xc6   :  { %v102_v22 = vadd.f32 %v202_v20, %v101_v21 }
  0xc7   :  { %v230_v23 = vpop.f32.mrf.mxu0 }
  0xc8   :  { %v106_v24 = vmul.f32 0.01, %v102_v22  ;;  %vm105_vm2 = vcmp.gt.f32.partialorder %v102_v22, 0.0 }
  0xca   :  { %v107_v25 = vsel %vm105_vm2, %v102_v22, %v106_v24 }
  0xcb   :  { %264 = vmatmul.mubr.f32.vlgmr.msra.gmra.mxu1 %v107_v25 }
 0x18b   :  { %v192_v27 = vpop.f32.mrf.mxu1 }
 0x18c   :  { %v193_v28 = vadd.f32 %v192_v27, %v125_v26 }
 0x18d   :  { %v265_v29 = vpop.f32.mrf.mxu1 }
 0x18e   :  { %197 = vst.msk [vmem:[%s373_s5] sm:$0xff] %vm196_vm3, %v193_v28 }

</bundles_post_ra>
